<compile_context>
chip_gen: v5e
topology: v5e:2x2
jax: 0.10.0
libtpu: 0.0.40
codegen_flags: <defaults>
</compile_context>

<pallas_src>
import jax
import jax.numpy as jnp
from jax.experimental import pallas as pl
from jax.experimental.pallas import tpu as pltpu

_VMEM_LIMIT = 64 * 1024 * 1024


def _pick_tile(dim, candidates):
    """Largest candidate that evenly divides `dim`, else the full dim."""
    for t in candidates:
        if t <= dim and dim % t == 0:
            return t
    return dim


# ----------------------------------------------------------------------------
# Kernel 1: pointwise correlation
#   corr[n, (dy,dx), y, x] = mean_c cur[n,c,y,x] * prev[n,c, y+dy*s, x+dx*s]
#   (zero padded outside; mean over channels — assumed PointwiseCorrelation
#    semantics, matches the previous implementation).
# Grid: (N, 2*disp+1)  — axis 1 is the dy index; dx handled by a short static
# loop inside the kernel.  cur / padded prev stay VMEM-resident across dy
# (constant block index), output block is the (dy, :, H, W) slice.
# ----------------------------------------------------------------------------
def _make_corr_kernel(disp, stride, C, H, W):
    D = 2 * disp + 1
    inv_c = 1.0 / float(C)

    def kernel(cur_ref, prev_ref, out_ref):
        # cur_ref : (C, H, W)          (leading batch dim squeezed)
        # prev_ref: (C, H+2p, W+2p)
        # out_ref : (D, H, W)          (the dy-row group of the d2 axis)
        j = pl.program_id(1)                               # dy index in [0, D)
        cur = cur_ref[...]                                 # (C, H, W)
        band = prev_ref[:, pl.ds(j * stride, H), :]        # (C, H, W+2p)
        for dxi in range(D):                               # short static loop
            ox = dxi * stride
            win = jax.lax.slice(band, (0, 0, ox), (C, H, ox + W))
            r = jnp.sum(cur * win, axis=0) * inv_c         # (H, W), f32 VPU reduce
            out_ref[dxi, :, :] = r.astype(out_ref.dtype)

    return kernel


def pointwise_correlation(cur, prev, disp, stride):
    """cur, prev: (N, C, H, W) -> (N, (2*disp+1)^2, H*W) (lane-dense view)."""
    N, C, H, W = cur.shape
    p = disp * stride
    D = 2 * disp + 1
    d2 = D * D
    Hp, Wp = H + 2 * p, W + 2 * p
    prev_pad = jnp.pad(prev, ((0, 0), (0, 0), (p, p), (p, p)))

    itemsize = jnp.dtype(cur.dtype).itemsize
    cost = pl.CostEstimate(
        flops=2 * N * d2 * C * H * W,
        transcendentals=0,
        bytes_accessed=itemsize * (N * C * H * W + N * C * Hp * Wp + N * d2 * H * W),
    )

    out = pl.pallas_call(
        _make_corr_kernel(disp, stride, C, H, W),
        out_shape=jax.ShapeDtypeStruct((N, d2, H, W), cur.dtype),
        grid=(N, D),
        in_specs=[
            pl.BlockSpec((None, C, H, W), lambda i, j: (i, 0, 0, 0)),
            pl.BlockSpec((None, C, Hp, Wp), lambda i, j: (i, 0, 0, 0)),
        ],
        out_specs=pl.BlockSpec((None, D, H, W), lambda i, j: (i, j, 0, 0)),
        compiler_params=pltpu.CompilerParams(
            dimension_semantics=("parallel", "parallel"),
            vmem_limit_bytes=_VMEM_LIMIT),
        cost_estimate=cost,
    )(cur, prev_pad)
    # Free (contiguous) reshape: downstream matmul consumes a lane-dense
    # (d2, H*W) slab per image.
    return out.reshape(N, d2, H * W)


# ----------------------------------------------------------------------------
# Kernel 2: tiled batched matmul  out[n] = relu?( W @ X[n] )
#   w: (O, K), x: (N, K, M) -> (N, O, M)
#   grid = (N, M_tiles, K_tiles); f32 accumulator scratch; reduction axis last.
#   Operands are expected in bf16 (MXU peak), accumulation in f32.
# ----------------------------------------------------------------------------
def _make_matmul_kernel(apply_relu):
    def kernel(w_ref, x_ref, o_ref, acc_ref):
        # w_ref: (O, tk), x_ref: (tk, tm), o_ref: (O, tm), acc_ref: (O, tm) f32
        @pl.when(pl.program_id(2) == 0)
        def _init():
            acc_ref[...] = jnp.zeros_like(acc_ref)

        acc_ref[...] += jnp.dot(w_ref[...], x_ref[...],
                                preferred_element_type=jnp.float32)

        @pl.when(pl.program_id(2) == pl.num_programs(2) - 1)
        def _finalize():
            r = acc_ref[...]
            if apply_relu:
                r = jnp.maximum(r, 0.0)
            o_ref[...] = r.astype(o_ref.dtype)

    return kernel


def batched_matmul(w, x, apply_relu=False, out_dtype=jnp.float32):
    n, k, m = x.shape
    o = w.shape[0]
    tk = _pick_tile(k, (512, 256, 128))
    tm = _pick_tile(m, (2048, 1024, 512, 256, 128))
    grid = (n, m // tm, k // tk)

    bytes_accessed = (w.size * jnp.dtype(w.dtype).itemsize
                      + x.size * jnp.dtype(x.dtype).itemsize
                      + n * o * m * jnp.dtype(out_dtype).itemsize)
    cost = pl.CostEstimate(flops=2 * n * o * k * m, transcendentals=0,
                           bytes_accessed=bytes_accessed)

    return pl.pallas_call(
        _make_matmul_kernel(apply_relu),
        out_shape=jax.ShapeDtypeStruct((n, o, m), out_dtype),
        grid=grid,
        in_specs=[
            pl.BlockSpec((o, tk), lambda i, mi, ki: (0, ki)),
            pl.BlockSpec((None, tk, tm), lambda i, mi, ki: (i, ki, mi)),
        ],
        out_specs=pl.BlockSpec((None, o, tm), lambda i, mi, ki: (i, 0, mi)),
        scratch_shapes=[pltpu.VMEM((o, tm), jnp.float32)],
        compiler_params=pltpu.CompilerParams(
            dimension_semantics=("parallel", "parallel", "arbitrary"),
            vmem_limit_bytes=_VMEM_LIMIT),
        cost_estimate=cost,
    )(w, x)


# ----------------------------------------------------------------------------
# Deformable convolution (DeformConv v1, mmcv semantics, bias=False) + ReLU.
# Bilinear im2col is JAX glue (see TODO at top); the (O, C*K*K) x (C*K*K, H*W)
# contraction + ReLU runs in the tiled bf16 Pallas matmul above.
# ----------------------------------------------------------------------------
def deform_conv_relu(x, offset, weight, kernel_size=3, padding=1,
                     deformable_groups=4):
    N, C, H, W = x.shape
    K = kernel_size
    KK = K * K
    DG = deformable_groups
    Cg = C // DG
    O = weight.shape[0]

    # mmcv offset channel order: (dg, kernel_pos, [y, x]).
    off = offset.reshape(N, DG, KK, 2, H, W)
    off_y = off[:, :, :, 0]                       # (N, DG, KK, H, W)
    off_x = off[:, :, :, 1]

    k_idx = jnp.arange(KK)
    kyi = (k_idx // K).astype(jnp.float32)
    kxi = (k_idx % K).astype(jnp.float32)
    grid_y = jnp.arange(H, dtype=jnp.float32)
    grid_x = jnp.arange(W, dtype=jnp.float32)
    base_py = grid_y[None, :, None] + kyi[:, None, None] - padding   # (KK, H, 1)
    base_px = grid_x[None, None, :] + kxi[:, None, None] - padding   # (KK, 1, W)

    py = off_y + base_py[None, None]              # (N, DG, KK, H, W)
    px = off_x + base_px[None, None]

    y0 = jnp.floor(py)
    x0 = jnp.floor(px)
    ly = py - y0
    lx = px - x0

    x_flat = x.reshape(N, DG, Cg, H * W)

    def corner(yc, xc, wgt):
        valid = (yc >= 0) & (yc <= H - 1) & (xc >= 0) & (xc <= W - 1)
        yci = jnp.clip(yc, 0, H - 1).astype(jnp.int32)
        xci = jnp.clip(xc, 0, W - 1).astype(jnp.int32)
        flat = (yci * W + xci).reshape(N, DG, KK * H * W)
        g = jnp.take_along_axis(x_flat, flat[:, :, None, :], axis=3)  # (N,DG,Cg,KK*HW)
        wv = (wgt * valid.astype(x.dtype)).reshape(N, DG, 1, KK * H * W)
        return g * wv

    cols = (corner(y0, x0, (1.0 - ly) * (1.0 - lx))
            + corner(y0, x0 + 1.0, (1.0 - ly) * lx)
            + corner(y0 + 1.0, x0, ly * (1.0 - lx))
            + corner(y0 + 1.0, x0 + 1.0, ly * lx))
    # (N, DG, Cg, KK*HW) -> (N, C*KK, HW); channel-major then kernel-pos
    # (matches weight.reshape(O, C*KK)).  Cast to bf16 so the big cols tensor
    # is materialized at half the HBM bytes and feeds the MXU at bf16 peak.
    cols = cols.reshape(N, DG, Cg, KK, H * W).reshape(N, C * KK, H * W)
    cols = cols.astype(jnp.bfloat16)
    w2 = weight.reshape(O, C * KK).astype(jnp.bfloat16)

    out = batched_matmul(w2, cols, apply_relu=True, out_dtype=x.dtype)
    return out.reshape(N, O, H, W)


# ----------------------------------------------------------------------------
# Module
# ----------------------------------------------------------------------------
class CorrelationAdaptorPallas:
    def __init__(self, in_channels, out_channels, displacements=(8, 8, 4, 2),
                 strides=(2, 1, 1, 1), kernel_size=3, deformable_groups=4,
                 key=None):
        assert len(displacements) == len(strides)
        assert in_channels % deformable_groups == 0
        self.in_channels = in_channels
        self.out_channels = out_channels
        self.displacements = tuple(displacements)
        self.strides = tuple(strides)
        self.kernel_size = kernel_size
        self.deformable_groups = deformable_groups
        offset_channels = kernel_size * kernel_size * 2

        if key is None:
            key = jax.random.PRNGKey(0)
        self.conv_offset_weights = []     # per level: (DG * 2 * K * K, (2d+1)^2)
        self.conv_adaption_weights = []   # per level: (out, in, K, K)
        for disp in displacements:
            key, k1, k2 = jax.random.split(key, 3)
            d2 = (2 * disp + 1) ** 2
            w_off = 0.01 * jax.random.normal(
                k1, (deformable_groups * offset_channels, d2), jnp.float32)
            w_ad = 0.01 * jax.random.normal(
                k2, (out_channels, in_channels, kernel_size, kernel_size),
                jnp.float32)
            self.conv_offset_weights.append(w_off)
            self.conv_adaption_weights.append(w_ad)

    def forward_single(self, inputs, level):
        time, batch, c, h, w = inputs.shape
        if time <= 1:
            return inputs.reshape(-1, c, h, w)
        disp = self.displacements[level]
        stride = self.strides[level]

        n = (time - 1) * batch
        # All (t, t-1) frame pairs batched into one pallas_call (no per-timestep
        # loop of kernel launches, no concatenate through HBM).
        cur = inputs[1:].reshape(n, c, h, w)
        prev = inputs[:-1].reshape(n, c, h, w)
        corr = pointwise_correlation(cur, prev, disp, stride)   # (n, d2, h*w)

        # 1x1 offset conv (bias=False in the reference) as a tiled bf16 matmul.
        w_off = self.conv_offset_weights[level].astype(jnp.bfloat16)
        offset = batched_matmul(w_off, corr.astype(jnp.bfloat16),
                                apply_relu=False, out_dtype=jnp.float32)
        offset = offset.reshape(n, -1, h, w)

        feats = deform_conv_relu(
            cur, offset, self.conv_adaption_weights[level],
            kernel_size=self.kernel_size,
            padding=(self.kernel_size - 1) // 2,
            deformable_groups=self.deformable_groups)
        return jnp.concatenate([inputs[0], feats], axis=0)

    def forward(self, input_list, in_dict=None, is_train=False):
        outs = []
        num_adapt_layers = len(self.conv_offset_weights)
        for level, inputs in enumerate(input_list[:num_adapt_layers]):
            outs.append(self.forward_single(inputs, level))
        for inputs in input_list[num_adapt_layers:]:
            time, batch, c, h, w = inputs.shape
            outs.append(inputs.reshape(time * batch, c, h, w))
        if is_train:
            return outs, None
        return outs, dict(inputs=input_list)


if __name__ == "__main__":
    key = jax.random.PRNGKey(0)
    k_model, k0, k1, k2 = jax.random.split(key, 4)

    # Small deterministic inputs: (time, batch, C, H, W)
    x0 = jax.random.normal(k0, (2, 2, 8, 16, 16), jnp.float32)
    x1 = jax.random.normal(k1, (2, 2, 8, 8, 8), jnp.float32)
    x2 = jax.random.normal(k2, (2, 2, 8, 8, 8), jnp.float32)  # pass-through level
    input_list = [x0, x1, x2]

    model = CorrelationAdaptorPallas(
        in_channels=8, out_channels=8,
        displacements=(2, 2), strides=(1, 1),
        kernel_size=3, deformable_groups=4, key=k_model)

    outs, out_dict = model.forward(input_list, is_train=False)
    for o in outs:
        jax.block_until_ready(o)

    # sanity: each adapted level keeps (time*batch, C, H, W)
    assert outs[0].shape == (4, 8, 16, 16)
    assert outs[1].shape == (4, 8, 8, 8)
    assert outs[2].shape == (4, 8, 8, 8)
    assert all(bool(jnp.isfinite(o).all()) for o in outs)
    print("KERNEL_OK")
</pallas_src>

<mosaic_0001>
module attributes {stable_mosaic.version = 11 : i64} {
  func.func @kernel(%arg0: i32, %arg1: i32, %arg2: memref<1x8x16x16xf32, #tpu.memory_space<vmem>>, %arg3: memref<1x8x20x20xf32, #tpu.memory_space<vmem>>, %arg4: memref<1x5x16x16xf32, #tpu.memory_space<vmem>>) attributes {dimension_semantics = [#tpu.dimension_semantics<parallel>, #tpu.dimension_semantics<parallel>], iteration_bounds = array<i64: 2, 5>, scalar_prefetch = 0 : i64, scratch_operands = 0 : i64, tpu.core_type = #tpu.core_type<tc>, window_params = [{transform_indices = @transform_0, window_bounds = array<i64: 1, 8, 16, 16>}, {transform_indices = @transform_1, window_bounds = array<i64: 1, 8, 20, 20>}, {transform_indices = @transform_2, window_bounds = array<i64: 1, 5, 16, 16>}]} {
    %c0 = arith.constant 0 : index
    %c0_0 = arith.constant 0 : index
    %c0_1 = arith.constant 0 : index
    %c0_2 = arith.constant 0 : index
    %0 = vector.load %arg2[%c0, %c0_0, %c0_1, %c0_2] : memref<1x8x16x16xf32, #tpu.memory_space<vmem>>, vector<1x8x16x16xf32>
    %1 = vector.shape_cast %0 : vector<1x8x16x16xf32> to vector<8x16x16xf32>
    %c1_i32 = arith.constant 1 : i32
    %2 = arith.muli %arg1, %c1_i32 : i32
    %c0_3 = arith.constant 0 : index
    %c0_4 = arith.constant 0 : index
    %3 = arith.index_cast %2 : i32 to index
    %c0_5 = arith.constant 0 : index
    %4 = vector.load %arg3[%c0_3, %c0_4, %3, %c0_5] : memref<1x8x20x20xf32, #tpu.memory_space<vmem>>, vector<1x8x16x20xf32>
    %5 = vector.shape_cast %4 : vector<1x8x16x20xf32> to vector<8x16x20xf32>
    %6 = vector.extract_strided_slice %5 {offsets = [0, 0, 0], sizes = [8, 16, 16], strides = [1, 1, 1]} : vector<8x16x20xf32> to vector<8x16x16xf32>
    %7 = arith.mulf %1, %6 : vector<8x16x16xf32>
    %cst = arith.constant dense<0.000000e+00> : vector<16x16xf32>
    %8 = vector.multi_reduction <add>, %7, %cst [0] : vector<8x16x16xf32> to vector<16x16xf32>
    %cst_6 = arith.constant 1.250000e-01 : f32
    %9 = vector.broadcast %cst_6 : f32 to vector<16x16xf32>
    %10 = arith.mulf %8, %9 : vector<16x16xf32>
    %c0_7 = arith.constant 0 : index
    %c0_8 = arith.constant 0 : index
    %c0_9 = arith.constant 0 : index
    %c0_10 = arith.constant 0 : index
    %11 = vector.load %arg4[%c0_7, %c0_8, %c0_9, %c0_10] : memref<1x5x16x16xf32, #tpu.memory_space<vmem>>, vector<1x1x16x16xf32>
    %12 = vector.shape_cast %11 : vector<1x1x16x16xf32> to vector<16x16xf32>
    %13 = vector.shape_cast %10 : vector<16x16xf32> to vector<1x1x16x16xf32>
    tpu.vector_store %arg4[%c0_7, %c0_8, %c0_9, %c0_10], %13 {strides = array<i32>} : memref<1x5x16x16xf32, #tpu.memory_space<vmem>>, vector<1x1x16x16xf32>,
    %14 = vector.extract_strided_slice %5 {offsets = [0, 0, 1], sizes = [8, 16, 16], strides = [1, 1, 1]} : vector<8x16x20xf32> to vector<8x16x16xf32>
    %15 = arith.mulf %1, %14 : vector<8x16x16xf32>
    %cst_11 = arith.constant dense<0.000000e+00> : vector<16x16xf32>
    %16 = vector.multi_reduction <add>, %15, %cst_11 [0] : vector<8x16x16xf32> to vector<16x16xf32>
    %cst_12 = arith.constant 1.250000e-01 : f32
    %17 = vector.broadcast %cst_12 : f32 to vector<16x16xf32>
    %18 = arith.mulf %16, %17 : vector<16x16xf32>
    %c0_13 = arith.constant 0 : index
    %c1 = arith.constant 1 : index
    %c0_14 = arith.constant 0 : index
    %c0_15 = arith.constant 0 : index
    %19 = vector.load %arg4[%c0_13, %c1, %c0_14, %c0_15] : memref<1x5x16x16xf32, #tpu.memory_space<vmem>>, vector<1x1x16x16xf32>
    %20 = vector.shape_cast %19 : vector<1x1x16x16xf32> to vector<16x16xf32>
    %21 = vector.shape_cast %18 : vector<16x16xf32> to vector<1x1x16x16xf32>
    tpu.vector_store %arg4[%c0_13, %c1, %c0_14, %c0_15], %21 {strides = array<i32>} : memref<1x5x16x16xf32, #tpu.memory_space<vmem>>, vector<1x1x16x16xf32>,
    %22 = vector.extract_strided_slice %5 {offsets = [0, 0, 2], sizes = [8, 16, 16], strides = [1, 1, 1]} : vector<8x16x20xf32> to vector<8x16x16xf32>
    %23 = arith.mulf %1, %22 : vector<8x16x16xf32>
    %cst_16 = arith.constant dense<0.000000e+00> : vector<16x16xf32>
    %24 = vector.multi_reduction <add>, %23, %cst_16 [0] : vector<8x16x16xf32> to vector<16x16xf32>
    %cst_17 = arith.constant 1.250000e-01 : f32
    %25 = vector.broadcast %cst_17 : f32 to vector<16x16xf32>
    %26 = arith.mulf %24, %25 : vector<16x16xf32>
    %c0_18 = arith.constant 0 : index
    %c2 = arith.constant 2 : index
    %c0_19 = arith.constant 0 : index
    %c0_20 = arith.constant 0 : index
    %27 = vector.load %arg4[%c0_18, %c2, %c0_19, %c0_20] : memref<1x5x16x16xf32, #tpu.memory_space<vmem>>, vector<1x1x16x16xf32>
    %28 = vector.shape_cast %27 : vector<1x1x16x16xf32> to vector<16x16xf32>
    %29 = vector.shape_cast %26 : vector<16x16xf32> to vector<1x1x16x16xf32>
    tpu.vector_store %arg4[%c0_18, %c2, %c0_19, %c0_20], %29 {strides = array<i32>} : memref<1x5x16x16xf32, #tpu.memory_space<vmem>>, vector<1x1x16x16xf32>,
    %30 = vector.extract_strided_slice %5 {offsets = [0, 0, 3], sizes = [8, 16, 16], strides = [1, 1, 1]} : vector<8x16x20xf32> to vector<8x16x16xf32>
    %31 = arith.mulf %1, %30 : vector<8x16x16xf32>
    %cst_21 = arith.constant dense<0.000000e+00> : vector<16x16xf32>
    %32 = vector.multi_reduction <add>, %31, %cst_21 [0] : vector<8x16x16xf32> to vector<16x16xf32>
    %cst_22 = arith.constant 1.250000e-01 : f32
    %33 = vector.broadcast %cst_22 : f32 to vector<16x16xf32>
    %34 = arith.mulf %32, %33 : vector<16x16xf32>
    %c0_23 = arith.constant 0 : index
    %c3 = arith.constant 3 : index
    %c0_24 = arith.constant 0 : index
    %c0_25 = arith.constant 0 : index
    %35 = vector.load %arg4[%c0_23, %c3, %c0_24, %c0_25] : memref<1x5x16x16xf32, #tpu.memory_space<vmem>>, vector<1x1x16x16xf32>
    %36 = vector.shape_cast %35 : vector<1x1x16x16xf32> to vector<16x16xf32>
    %37 = vector.shape_cast %34 : vector<16x16xf32> to vector<1x1x16x16xf32>
    tpu.vector_store %arg4[%c0_23, %c3, %c0_24, %c0_25], %37 {strides = array<i32>} : memref<1x5x16x16xf32, #tpu.memory_space<vmem>>, vector<1x1x16x16xf32>,
    %38 = vector.extract_strided_slice %5 {offsets = [0, 0, 4], sizes = [8, 16, 16], strides = [1, 1, 1]} : vector<8x16x20xf32> to vector<8x16x16xf32>
    %39 = arith.mulf %1, %38 : vector<8x16x16xf32>
    %cst_26 = arith.constant dense<0.000000e+00> : vector<16x16xf32>
    %40 = vector.multi_reduction <add>, %39, %cst_26 [0] : vector<8x16x16xf32> to vector<16x16xf32>
    %cst_27 = arith.constant 1.250000e-01 : f32
    %41 = vector.broadcast %cst_27 : f32 to vector<16x16xf32>
    %42 = arith.mulf %40, %41 : vector<16x16xf32>
    %c0_28 = arith.constant 0 : index
    %c4 = arith.constant 4 : index
    %c0_29 = arith.constant 0 : index
    %c0_30 = arith.constant 0 : index
    %43 = vector.load %arg4[%c0_28, %c4, %c0_29, %c0_30] : memref<1x5x16x16xf32, #tpu.memory_space<vmem>>, vector<1x1x16x16xf32>
    %44 = vector.shape_cast %43 : vector<1x1x16x16xf32> to vector<16x16xf32>
    %45 = vector.shape_cast %42 : vector<16x16xf32> to vector<1x1x16x16xf32>
    tpu.vector_store %arg4[%c0_28, %c4, %c0_29, %c0_30], %45 {strides = array<i32>} : memref<1x5x16x16xf32, #tpu.memory_space<vmem>>, vector<1x1x16x16xf32>,
    return
  }
  func.func @transform_0(%arg0: i32, %arg1: i32) -> (i32, i32, i32, i32) {
    %c0_i32 = arith.constant 0 : i32
    %c0_i32_0 = arith.constant 0 : i32
    %c0_i32_1 = arith.constant 0 : i32
    %c0_i32_2 = arith.constant 0 : i32
    return %arg0, %c0_i32, %c0_i32_0, %c0_i32_1 : i32, i32, i32, i32
  }
  func.func @transform_1(%arg0: i32, %arg1: i32) -> (i32, i32, i32, i32) {
    %c0_i32 = arith.constant 0 : i32
    %c0_i32_0 = arith.constant 0 : i32
    %c0_i32_1 = arith.constant 0 : i32
    %c0_i32_2 = arith.constant 0 : i32
    return %arg0, %c0_i32, %c0_i32_0, %c0_i32_1 : i32, i32, i32, i32
  }
  func.func @transform_2(%arg0: i32, %arg1: i32) -> (i32, i32, i32, i32) {
    %c0_i32 = arith.constant 0 : i32
    %c0_i32_0 = arith.constant 0 : i32
    %c0_i32_1 = arith.constant 0 : i32
    return %arg0, %arg1, %c0_i32, %c0_i32_0 : i32, i32, i32, i32
  }
}

</mosaic_0001>

<bundles_post_ra>
// kernel: tpu_custom_call.1
= control target key start
LH: loop header
LB: loop body
LE: loop exit
PB: predicated region body
PF: predicated region fallthrough
CT: control target
= control target key end

     0   :  { %s914_s9 = smov 0   ;;  %s916_s10 = smov 0   ;;  %s1423_s0 = inlined_call_operand.vmem [shape: f32[2,8,16,16], index: 0, kind: input, shape index: {}]   ;;  %s1424_s1 = inlined_call_operand.vmem [shape: f32[2,8,20,20], index: 1, kind: input, shape index: {}]   ;;  %s1425_s2 = inlined_call_operand.vmem [shape: f32[2,25,16,16], index: 2, kind: output, shape index: {}]  }
   0x1   :  { %s918_s11 = smov 0   ;;  %s920_s12 = smov 0  }
   0x2   :  { %s922_s13 = smov 0  }
   0x3 LB: > { %s21_s14 = sadd.s32 1, %s885_s11  ;;  %s24_s15 = sadd.s32 1, %s889_s12  ;;  %s893_s13 = sphi %s922_s13, %s12_s13   ;;  %s889_s12 = sphi %s920_s12, %s1429_s12   ;;  %s885_s11 = sphi %s918_s11, %s1428_s11   ;;  %s881_s10 = sphi %s916_s10, %s1427_s10   ;;  %s877_s9 = sphi %s914_s9, %s1426_s9  }
   0x4   : > { %p22_p0 = scmp.ge.s32.totalorder %s21_s14, 5  ;;  %p792_p1 = scmp.ge.s32.totalorder %s893_s13, 1 }
   0x5   : > { %p136_p2 = scmp.lt.s32.totalorder %s893_s13, 11 }
   0x6   : > { %s1431_s14 = smov (%p22_p0, %s21_s14), 0  ;;  %s1433_s15 = smov (!%p22_p0, %s24_s15), %s889_s12 }
   0x7   : > { %p137_p3 = pnand %p792_p1, %p136_p2  ;;  %p26_p4 = scmp.ge.s32.totalorder %s1433_s15, 2 }
   0x8   : > { %p168_p5 = scmp.lt.s32.totalorder (!%p137_p3), %s881_s10, 1  ;;  %s895_s21 = smov (!%p137_p3), 127  }
   0x9   : > { %s1435_s15 = smov (%p26_p4, %s1433_s15), 0  ;;  %140 = sbr.rel (%p137_p3) target bundleno = 311 (0x137), region = 28 }
   0xa   : > { %s896_s22 = smov (!%p137_p3), 126   ;;  %s897_s23 = smov (!%p137_p3), 125  }
   0xb   : > { %s178_s28 = smul.u32 (!%p137_p3), 5, %s877_s9  ;;  %s898_s3 = smov (!%p137_p3), 124  }
   0xd   : > { %p181_p6 = scmp.lt.s32.totalorder (!%p137_p3), %s178_s28, 24 }
   0xe   : > { %s1437_s10 = smov (!%p168_p5, %s881_s10), 1  ;;  %vm238_vm0 = vcmask 130048  }
   0xf   : > { %s809_s16 = smul.u32 192, %s1437_s10  ;;  %s808_s24 = sshll.u32 %s1437_s10, 7 }
  0x10   : > { %s1063_s27 = scalar_lea.vmem %s1423_s0, %s808_s24  ;;  %s1439_s28 = smov (!%p181_p6, %s178_s28), 24 }
  0x11   : > { %s177_s19 = scalar_lea.vmem %s1424_s1, %s809_s16  ;;  %v1068_v17 = vld [vmem:[%s1063_s27 + $0x10] sm:$0xff]  ;;  %v1071_v18 = vld [vmem:[%s1063_s27] sm:$0xff]  ;;  %v1087_v23 = vld [vmem:[%s1063_s27 + $0x18] sm:$0xff]  ;;  %s810_s29 = smul.u32 50, %s1437_s10 }
  0x12   : > { %s953_s20 = scalar_lea.vmem %s177_s19, %s877_s9  ;;  %v1082_v21 = vld [vmem:[%s1063_s27 + $0x20] sm:$0xff]  ;;  %v1090_v24 = vld [vmem:[%s1063_s27 + $0x8] sm:$0xff]  ;;  %v1107_v33 = vld [vmem:[%s1063_s27 + $0x30] sm:$0xff]  ;;  %s796_s30 = sshll.u32 %s1439_s28, 1 }
  0x13   : > { %v956_v0 = vld [vmem:[%s953_s20 + $0x18] sm:$0xff]  ;;  %v959_v1 = vld [vmem:[%s953_s20] sm:$0xff]  ;;  %v966_v2 = vld [vmem:[%s953_s20 + $0x30] sm:$0xff]  ;;  %s185_s4 = sadd.s32 %s810_s29, %s796_s30 }
  0x14   : > { %293 = vrot.lane.b32.xlu1 %v956_v0, %s895_s21  ;;  %289 = vrot.lane.b32.xlu0 %v959_v1, %s895_s21  ;;  %v971_v3 = vld [vmem:[%s953_s20 + $0x20] sm:$0xff]  ;;  %v974_v4 = vld [vmem:[%s953_s20 + $0x8] sm:$0xff]  ;;  %v224_v19 = vmul.f32 %v956_v0, %v1068_v17  ;;  %v222_v20 = vmul.f32 %v959_v1, %v1071_v18  ;;  %v226_v22 = vmul.f32 %v966_v2, %v1082_v21  ;;  %s797_s5 = sshll.u32 %s185_s4, 3 }
  0x15   : > { %297 = vrot.lane.b32.xlu2 %v966_v2, %s895_s21  ;;  %v977_v5 = vld [vmem:[%s953_s20 + $0x38] sm:$0xff]  ;;  %v986_v6 = vld [vmem:[%s953_s20 + $0x50] sm:$0xff]  ;;  %v989_v7 = vld [vmem:[%s953_s20 + $0x48] sm:$0xff]  ;;  %v225_v27 = vmul.f32 %v971_v3, %v1087_v23  ;;  %v223_v28 = vmul.f32 %v974_v4, %v1090_v24  ;;  %s1195_s8 = scalar_lea.vmem %s1425_s2, %s797_s5 }
  0x16   : > { %v992_v8 = vld [vmem:[%s953_s20 + $0x60] sm:$0xff]  ;;  %v1001_v9 = vld [vmem:[%s953_s20 + $0x78] sm:$0xff]  ;;  %v1004_v10 = vld [vmem:[%s953_s20 + $0x68] sm:$0xff]  ;;  %v240_v25 = vsel %vm238_vm0, %v224_v19, 0.0  ;;  %v239_v26 = vsel %vm238_vm0, %v222_v20, 0.0  ;;  %v242_v30 = vsel %vm238_vm0, %v226_v22, 0.0  ;;  %v228_v37 = vmul.f32 %v989_v7, %v1107_v33 }
  0x17   : > { %v1007_v11 = vld [vmem:[%s953_s20 + $0x80] sm:$0xff]  ;;  %v1016_v12 = vld [vmem:[%s953_s20 + $0x98] sm:$0xff]  ;;  %v1019_v13 = vld [vmem:[%s953_s20 + $0x90] sm:$0xff]  ;;  %v241_v31 = vadd.f32 %v240_v25, %v239_v26  ;;  %v255_v35 = vsel %vm238_vm0, %v225_v27, 0.0  ;;  %v254_v36 = vsel %vm238_vm0, %v223_v28, 0.0 }
  0x18   : > { %v1022_v14 = vld [vmem:[%s953_s20 + $0xa8] sm:$0xff]  ;;  %v1031_v15 = vld [vmem:[%s953_s20 + $0xb0] sm:$0xff]  ;;  %v256_v38 = vadd.f32 %v255_v35, %v254_v36  ;;  %v1120_v39 = vld [vmem:[%s1063_s27 + $0x40] sm:$0xff]  ;;  %v244_v45 = vsel %vm238_vm0, %v228_v37, 0.0 }
  0x19   : > { %v1104_v32 = vld [vmem:[%s1063_s27 + $0x28] sm:$0xff]  ;;  %v1123_v40 = vld [vmem:[%s1063_s27 + $0x38] sm:$0xff]  ;;  %v243_v41 = vadd.f32 %v242_v30, %v241_v31  ;;  %v230_v43 = vmul.f32 %v992_v8, %v1120_v39  ;;  %v1137_v49 = vld [vmem:[%s1063_s27 + $0x50] sm:$0xff] }
  0x1a   : > { %v227_v34 = vmul.f32 %v977_v5, %v1104_v32  ;;  %v229_v44 = vmul.f32 %v986_v6, %v1123_v40  ;;  %v1140_v50 = vld [vmem:[%s1063_s27 + $0x48] sm:$0xff]  ;;  %v232_v53 = vmul.f32 %v1001_v9, %v1137_v49  ;;  %v1153_v56 = vld [vmem:[%s1063_s27 + $0x58] sm:$0xff]  ;;  %v1162_v63 = vld [vmem:[%s1063_s27 + $0x70] sm:$0xff] }
  0x1b   : > { %v245_v48 = vadd.f32 %v244_v45, %v243_v41  ;;  %v246_v51 = vsel %vm238_vm0, %v230_v43, 0.0  ;;  %v231_v54 = vmul.f32 %v1004_v10, %v1140_v50  ;;  %v233_v60 = vmul.f32 %v1007_v11, %v1153_v56  ;;  %v1170_v26 = vld [vmem:[%s1063_s27 + $0x68] sm:$0xff]  ;;  %v1173_v27 = vld [vmem:[%s1063_s27 + $0x60] sm:$0xff] }
  0x1c   : > { %295 = vrot.lane.b32.xlu1 %v971_v3, %s895_s21  ;;  %291 = vrot.lane.b32.xlu0 %v974_v4, %s895_s21  ;;  %v257_v42 = vsel %vm238_vm0, %v227_v34, 0.0  ;;  %v259_v52 = vsel %vm238_vm0, %v229_v44, 0.0  ;;  %v248_v61 = vsel %vm238_vm0, %v232_v53, 0.0  ;;  %v236_v20 = vmul.f32 %v1022_v14, %v1162_v63 }
  0x1d   : > { %299 = vrot.lane.b32.xlu2 %v977_v5, %s895_s21  ;;  %v258_v47 = vadd.f32 %v257_v42, %v256_v38  ;;  %v247_v57 = vadd.f32 %v246_v51, %v245_v48  ;;  %v261_v62 = vsel %vm238_vm0, %v231_v54, 0.0  ;;  %v263_v28 = vsel %vm238_vm0, %v233_v60, 0.0 }
  0x1e   : > { %v235_v30 = vmul.f32 %v1016_v12, %v1170_v26  ;;  %v234_v31 = vmul.f32 %v1019_v13, %v1173_v27  ;;  %v252_v34 = vsel %vm238_vm0, %v236_v20, 0.0 }
  0x1f   : > { %v260_v55 = vadd.f32 %v259_v52, %v258_v47  ;;  %v249_v22 = vadd.f32 %v248_v61, %v247_v57 }
  0x20   : > { %v250_v35 = vsel %vm238_vm0, %v234_v31, 0.0  ;;  %v265_v42 = vsel %vm238_vm0, %v235_v30, 0.0 }
  0x21   : > { %v262_v25 = vadd.f32 %v261_v62, %v260_v55  ;;  %v251_v37 = vadd.f32 %v250_v35, %v249_v22 }
  0x23   : > { %v264_v36 = vadd.f32 %v263_v28, %v262_v25 }
  0x24   : > { %303 = vrot.lane.b32.xlu1 %v986_v6, %s895_s21  ;;  %301 = vrot.lane.b32.xlu0 %v989_v7, %s895_s21 }
  0x25   : > { %305 = vrot.lane.b32.xlu2 %v992_v8, %s895_s21  ;;  %v266_v44 = vadd.f32 %v265_v42, %v264_v36 }
  0x2c   : > { %309 = vrot.lane.b32.xlu1 %v1001_v9, %s895_s21  ;;  %307 = vrot.lane.b32.xlu0 %v1004_v10, %s895_s21 }
  0x2d   : > { %311 = vrot.lane.b32.xlu2 %v1007_v11, %s895_s21 }
  0x34   : > { %315 = vrot.lane.b32.xlu1 %v1016_v12, %s895_s21  ;;  %313 = vrot.lane.b32.xlu0 %v1019_v13, %s895_s21 }
  0x35   : > { %317 = vrot.lane.b32.xlu2 %v1022_v14, %s895_s21 }
  0x3c   : > { %388 = vrot.lane.b32.xlu1 %v959_v1, %s896_s22  ;;  %319 = vrot.lane.b32.xlu0 %v1031_v15, %s895_s21 }
  0x3d   : > { %390 = vrot.lane.b32.xlu2 %v974_v4, %s896_s22 }
  0x44   : > { %394 = vrot.lane.b32.xlu1 %v971_v3, %s896_s22  ;;  %392 = vrot.lane.b32.xlu0 %v956_v0, %s896_s22 }
  0x45   : > { %396 = vrot.lane.b32.xlu2 %v966_v2, %s896_s22 }
  0x4c   : > { %400 = vrot.lane.b32.xlu1 %v989_v7, %s896_s22  ;;  %398 = vrot.lane.b32.xlu0 %v977_v5, %s896_s22 }
  0x4d   : > { %402 = vrot.lane.b32.xlu2 %v986_v6, %s896_s22 }
  0x54   : > { %406 = vrot.lane.b32.xlu1 %v1004_v10, %s896_s22  ;;  %404 = vrot.lane.b32.xlu0 %v992_v8, %s896_s22 }
  0x55   : > { %408 = vrot.lane.b32.xlu2 %v1001_v9, %s896_s22 }
  0x5c   : > { %412 = vrot.lane.b32.xlu1 %v1019_v13, %s896_s22  ;;  %410 = vrot.lane.b32.xlu0 %v1007_v11, %s896_s22 }
  0x5d   : > { %414 = vrot.lane.b32.xlu2 %v1016_v12, %s896_s22 }
  0x64   : > { %418 = vrot.lane.b32.xlu1 %v1031_v15, %s896_s22  ;;  %416 = vrot.lane.b32.xlu0 %v1022_v14, %s896_s22 }
  0x65   : > { %487 = vrot.lane.b32.xlu2 %v959_v1, %s897_s23 }
  0x6c   : > { %491 = vrot.lane.b32.xlu1 %v956_v0, %s897_s23  ;;  %489 = vrot.lane.b32.xlu0 %v974_v4, %s897_s23 }
  0x6d   : > { %493 = vrot.lane.b32.xlu2 %v971_v3, %s897_s23 }
  0x6f   : > { %v1065_v16 = vpop.permute.xlu2 %297 }
  0x74   : > { %497 = vrot.lane.b32.xlu1 %v977_v5, %s897_s23  ;;  %495 = vrot.lane.b32.xlu0 %v966_v2, %s897_s23 }
  0x75   : > { %499 = vrot.lane.b32.xlu2 %v989_v7, %s897_s23 }
  0x77   : > { %v1100_v29 = vpop.permute.xlu2 %299 }
  0x7c   : > { %503 = vrot.lane.b32.xlu1 %v992_v8, %s897_s23  ;;  %501 = vrot.lane.b32.xlu0 %v986_v6, %s897_s23 }
  0x7d   : > { %505 = vrot.lane.b32.xlu2 %v1004_v10, %s897_s23 }
  0x7f   : > { %v1134_v46 = vpop.permute.xlu2 %305 }
  0x84   : > { %509 = vrot.lane.b32.xlu1 %v1007_v11, %s897_s23  ;;  %507 = vrot.lane.b32.xlu0 %v1001_v9, %s897_s23 }
  0x85   : > { %511 = vrot.lane.b32.xlu2 %v1019_v13, %s897_s23 }
  0x86   : > { %v294_v58 = vpop.permute.xlu1 %293  ;;  %v290_v59 = vpop.permute.xlu0 %289 }
  0x87   : > { %v1164_v19 = vpop.permute.xlu2 %311  ;;  %v339_v48 = vmul.f32 %v294_v58, %v1068_v17  ;;  %v337_v51 = vmul.f32 %v290_v59, %v1071_v18 }
  0x89   : > { %v353_v60 = vsel %vm238_vm0, %v337_v51, 0.0 }
  0x8c   : > { %588 = vrot.lane.b32.xlu1 %v974_v4, %s898_s3  ;;  %586 = vrot.lane.b32.xlu0 %v959_v1, %s898_s3  ;;  %v253_v4 = vadd.f32 %v252_v34, %v251_v37  ;;  %v1190_v1 = vld [vmem:[%s1063_s27 + $0x78] sm:$0xff] }
  0x8d   : > { %590 = vrot.lane.b32.xlu2 %v956_v0, %s898_s3  ;;  %v237_v47 = vmul.f32 %v1031_v15, %v1190_v1 }
  0x8e   : > { %v296_v38 = vpop.permute.xlu1 %295  ;;  %v292_v41 = vpop.permute.xlu0 %291  ;;  %v269_v45 = vmul.f32 0.125, %v253_v4 }
  0x8f   : > { %v318_v43 = vpop.permute.xlu2 %317  ;;  %v267_v0 = vsel %vm238_vm0, %v237_v47, 0.0  ;;  %v340_v58 = vmul.f32 %v296_v38, %v1087_v23  ;;  %v338_v59 = vmul.f32 %v292_v41, %v1090_v24 }
  0x90   : > { %271 = vst.msk [vmem:[%s1195_s8] sm:$0xff] %vm238_vm0, %v269_v45  ;;  %v268_v52 = vadd.f32 %v267_v0, %v266_v44  ;;  %v351_v42 = vmul.f32 %v318_v43, %v1162_v63  ;;  %v348_v0 = vmul.f32 %v1164_v19, %v1153_v56 }
  0x91   : > { %v369_v25 = vsel %vm238_vm0, %v340_v58, 0.0  ;;  %v368_v28 = vsel %vm238_vm0, %v338_v59, 0.0 }
  0x92   : > { %v270_v55 = vmul.f32 0.125, %v268_v52  ;;  %v370_v35 = vadd.f32 %v369_v25, %v368_v28 }
  0x94   : > { %594 = vrot.lane.b32.xlu1 %v966_v2, %s898_s3  ;;  %592 = vrot.lane.b32.xlu0 %v971_v3, %s898_s3  ;;  %v341_v2 = vmul.f32 %v1065_v16, %v1082_v21  ;;  %v354_v3 = vsel %vm238_vm0, %v339_v48, 0.0  ;;  %272 = vst.msk [vmem:[%s1195_s8 + $0x8] sm:$0xff] %vm238_vm0, %v270_v55  ;;  %v342_v16 = vmul.f32 %v1100_v29, %v1104_v32 }
  0x95   : > { %596 = vrot.lane.b32.xlu2 %v977_v5, %s898_s3  ;;  %v355_v62 = vadd.f32 %v354_v3, %v353_v60 }
  0x96   : > { %v304_v53 = vpop.permute.xlu1 %303  ;;  %v302_v54 = vpop.permute.xlu0 %301  ;;  %v356_v5 = vsel %vm238_vm0, %v341_v2, 0.0 }
  0x97   : > { %v1210_v57 = vpop.permute.xlu2 %390  ;;  %v343_v61 = vmul.f32 %v302_v54, %v1107_v33  ;;  %v344_v34 = vmul.f32 %v304_v53, %v1123_v40  ;;  %v366_v53 = vsel %vm238_vm0, %v351_v42, 0.0 }
  0x99   : > { %v358_v30 = vsel %vm238_vm0, %v343_v61, 0.0 }
  0x9c   : > { %600 = vrot.lane.b32.xlu1 %v986_v6, %s898_s3  ;;  %598 = vrot.lane.b32.xlu0 %v989_v7, %s898_s3  ;;  %v345_v6 = vmul.f32 %v1134_v46, %v1120_v39  ;;  %v357_v7 = vadd.f32 %v356_v5, %v355_v62  ;;  %v373_v46 = vsel %vm238_vm0, %v344_v34, 0.0  ;;  %v437_v34 = vmul.f32 %v1210_v57, %v1090_v24 }
  0x9d   : > { %602 = vrot.lane.b32.xlu2 %v992_v8, %s898_s3  ;;  %v371_v8 = vsel %vm238_vm0, %v342_v16, 0.0 }
  0x9e   : > { %v310_v20 = vpop.permute.xlu1 %309  ;;  %v308_v22 = vpop.permute.xlu0 %307  ;;  %v359_v36 = vadd.f32 %v358_v30, %v357_v7  ;;  %v360_v37 = vsel %vm238_vm0, %v345_v6, 0.0  ;;  %v372_v4 = vadd.f32 %v371_v8, %v370_v35 }
  0x9f   : > { %v1235_v31 = vpop.permute.xlu2 %396  ;;  %v347_v29 = vmul.f32 %v310_v20, %v1137_v49  ;;  %v346_v38 = vmul.f32 %v308_v22, %v1140_v50 }
  0xa0   : > { %v361_v44 = vadd.f32 %v360_v37, %v359_v36  ;;  %v374_v48 = vadd.f32 %v373_v46, %v372_v4  ;;  %v440_v46 = vmul.f32 %v1235_v31, %v1082_v21 }
  0xa1   : > { %v362_v41 = vsel %vm238_vm0, %v347_v29, 0.0 }
  0xa2   : > { %v363_v51 = vadd.f32 %v362_v41, %v361_v44 }
  0xa4   : > { %606 = vrot.lane.b32.xlu1 %v1001_v9, %s898_s3  ;;  %604 = vrot.lane.b32.xlu0 %v1004_v10, %s898_s3  ;;  %v375_v9 = vsel %vm238_vm0, %v346_v38, 0.0 }
  0xa5   : > { %608 = vrot.lane.b32.xlu2 %v1007_v11, %s898_s3  ;;  %v376_v55 = vadd.f32 %v375_v9, %v374_v48  ;;  %v377_v11 = vsel %vm238_vm0, %v348_v0, 0.0  ;;  %v455_v9 = vsel %vm238_vm0, %v440_v46, 0.0 }
  0xa6   : > { %v316_v45 = vpop.permute.xlu1 %315  ;;  %v314_v47 = vpop.permute.xlu0 %313 }
  0xa7   : > { %v349_v10 = vmul.f32 %v314_v47, %v1173_v27  ;;  %v403_v52 = vpop.permute.xlu2 %402  ;;  %v350_v43 = vmul.f32 %v316_v45, %v1170_v26  ;;  %v378_v60 = vadd.f32 %v377_v11, %v376_v55 }
  0xa8   : > { %v443_v4 = vmul.f32 %v403_v52, %v1123_v40 }
  0xa9   : > { %v364_v54 = vsel %vm238_vm0, %v349_v10, 0.0  ;;  %v379_v19 = vsel %vm238_vm0, %v350_v43, 0.0 }
  0xaa   : > { %v365_v2 = vadd.f32 %v364_v54, %v363_v51  ;;  %v380_v5 = vadd.f32 %v379_v19, %v378_v60  ;;  %v472_v51 = vsel %vm238_vm0, %v443_v4, 0.0 }
  0xac   : > { %v367_v3 = vadd.f32 %v366_v53, %v365_v2  ;;  %610 = vrot.lane.b32.xlu1 %v1019_v13, %s898_s3  ;;  %513 = vrot.lane.b32.xlu0 %v1016_v12, %s897_s23 }
  0xad   : > { %612 = vrot.lane.b32.xlu2 %v1016_v12, %s898_s3 }
  0xae   : > { %v383_v58 = vmul.f32 0.125, %v367_v3  ;;  %v389_v59 = vpop.permute.xlu1 %388  ;;  %v320_v61 = vpop.permute.xlu0 %319 }
  0xaf   : > { %v352_v62 = vmul.f32 %v320_v61, %v1190_v1  ;;  %v409_v16 = vpop.permute.xlu2 %408  ;;  %v436_v29 = vmul.f32 %v389_v59, %v1071_v18 }
  0xb0   : > { %798 = vst.msk [vmem:[%s1195_s8 + $0x10] sm:$0xff] %vm238_vm0, %v383_v58  ;;  %v446_v55 = vmul.f32 %v409_v16, %v1137_v49 }
  0xb1   : > { %v381_v13 = vsel %vm238_vm0, %v352_v62, 0.0 }
  0xb2   : > { %v382_v20 = vadd.f32 %v381_v13, %v380_v5 }
  0xb4   : > { %v384_v22 = vmul.f32 0.125, %v382_v20  ;;  %517 = vrot.lane.b32.xlu1 %v1031_v15, %s897_s23  ;;  %515 = vrot.lane.b32.xlu0 %v1022_v14, %s897_s23  ;;  %v461_v20 = vsel %vm238_vm0, %v446_v55, 0.0 }
  0xb5   : > { %614 = vrot.lane.b32.xlu2 %v1022_v14, %s898_s3  ;;  %v467_v14 = vsel %vm238_vm0, %v437_v34, 0.0 }
  0xb6   : > { %799 = vst.msk [vmem:[%s1195_s8 + $0x18] sm:$0xff] %vm238_vm0, %v384_v22  ;;  %v395_v25 = vpop.permute.xlu1 %394  ;;  %v393_v12 = vpop.permute.xlu0 %392 }
  0xb7   : > { %v415_v28 = vpop.permute.xlu2 %414  ;;  %v439_v35 = vmul.f32 %v395_v25, %v1087_v23  ;;  %v438_v36 = vmul.f32 %v393_v12, %v1068_v17 }
  0xb8   : > { %v449_v59 = vmul.f32 %v415_v28, %v1170_v26 }
  0xb9   : > { %v468_v41 = vsel %vm238_vm0, %v439_v35, 0.0  ;;  %v453_v57 = vsel %vm238_vm0, %v438_v36, 0.0 }
  0xba   : > { %v469_v47 = vadd.f32 %v468_v41, %v467_v14  ;;  %v478_v22 = vsel %vm238_vm0, %v449_v59, 0.0 }
  0xbc   : > { %616 = vrot.lane.b32.xlu0 %v1031_v15, %s898_s3  ;;  %v452_v15 = vsel %vm238_vm0, %v436_v29, 0.0 }
  0xbd   : > { %v454_v0 = vadd.f32 %v453_v57, %v452_v15 }
  0xbe   : > { %v401_v6 = vpop.permute.xlu1 %400  ;;  %v399_v30 = vpop.permute.xlu0 %398 }
  0xbf   : > { %v1280_v7 = vpop.permute.xlu2 %487  ;;  %v441_v8 = vmul.f32 %v399_v30, %v1104_v32  ;;  %v442_v44 = vmul.f32 %v401_v6, %v1107_v33  ;;  %v456_v43 = vadd.f32 %v455_v9, %v454_v0 }
  0xc0   : > { %v535_v59 = vmul.f32 %v1280_v7, %v1071_v18 }
  0xc1   : > { %v470_v45 = vsel %vm238_vm0, %v441_v8, 0.0  ;;  %v457_v53 = vsel %vm238_vm0, %v442_v44, 0.0 }
  0xc2   : > { %v471_v48 = vadd.f32 %v470_v45, %v469_v47  ;;  %v458_v19 = vadd.f32 %v457_v53, %v456_v43 }
  0xc4   : > { %v473_v60 = vadd.f32 %v472_v51, %v471_v48 }
  0xc6   : > { %v407_v37 = vpop.permute.xlu1 %406  ;;  %v405_v38 = vpop.permute.xlu0 %404 }
  0xc7   : > { %v1294_v42 = vpop.permute.xlu2 %493  ;;  %v445_v10 = vmul.f32 %v407_v37, %v1140_v50  ;;  %v444_v31 = vmul.f32 %v405_v38, %v1120_v39 }
  0xc9   : > { %v474_v2 = vsel %vm238_vm0, %v445_v10, 0.0  ;;  %v459_v11 = vsel %vm238_vm0, %v444_v31, 0.0 }
  0xca   : > { %v475_v5 = vadd.f32 %v474_v2, %v473_v60  ;;  %v460_v13 = vadd.f32 %v459_v11, %v458_v19 }
  0xcc   : > { %v462_v12 = vadd.f32 %v461_v20, %v460_v13 }
  0xce   : > { %v413_v54 = vpop.permute.xlu1 %412  ;;  %v411_v52 = vpop.permute.xlu0 %410 }
  0xcf   : > { %v447_v3 = vmul.f32 %v411_v52, %v1153_v56  ;;  %v500_v58 = vpop.permute.xlu2 %499  ;;  %v448_v61 = vmul.f32 %v413_v54, %v1173_v27 }
  0xd1   : > { %v476_v62 = vsel %vm238_vm0, %v447_v3, 0.0  ;;  %v463_v25 = vsel %vm238_vm0, %v448_v61, 0.0 }
  0xd2   : > { %v477_v16 = vadd.f32 %v476_v62, %v475_v5  ;;  %v464_v29 = vadd.f32 %v463_v25, %v462_v12  ;;  %v538_v5 = vmul.f32 %v1294_v42, %v1087_v23  ;;  %v551_v12 = vsel %vm238_vm0, %v535_v59, 0.0 }
  0xd4   : > { %v479_v35 = vadd.f32 %v478_v22, %v477_v16  ;;  %v567_v42 = vsel %vm238_vm0, %v538_v5, 0.0 }
  0xd6   : > { %v419_v6 = vpop.permute.xlu1 %418  ;;  %v417_v30 = vpop.permute.xlu0 %416 }
  0xd7   : > { %v451_v28 = vmul.f32 %v419_v6, %v1190_v1  ;;  %v450_v34 = vmul.f32 %v417_v30, %v1162_v63  ;;  %v506_v36 = vpop.permute.xlu2 %505  ;;  %v541_v6 = vmul.f32 %v500_v58, %v1107_v33 }
  0xd9   : > { %v480_v8 = vsel %vm238_vm0, %v451_v28, 0.0  ;;  %v465_v14 = vsel %vm238_vm0, %v450_v34, 0.0 }
  0xda   : > { %v481_v37 = vadd.f32 %v480_v8, %v479_v35  ;;  %v466_v38 = vadd.f32 %v465_v14, %v464_v29 }
  0xdc   : > { %v483_v15 = vmul.f32 0.125, %v481_v37  ;;  %v482_v46 = vmul.f32 0.125, %v466_v38 }
  0xde   : > { %801 = vst.msk [vmem:[%s1195_s8 + $0x28] sm:$0xff] %vm238_vm0, %v483_v15  ;;  %v492_v41 = vpop.permute.xlu1 %491  ;;  %v490_v57 = vpop.permute.xlu0 %489 }
  0xdf   : > { %800 = vst.msk [vmem:[%s1195_s8 + $0x20] sm:$0xff] %vm238_vm0, %v482_v46  ;;  %v1322_v4 = vpop.permute.xlu2 %511  ;;  %v537_v61 = vmul.f32 %v492_v41, %v1068_v17  ;;  %v536_v13 = vmul.f32 %v490_v57, %v1090_v24 }
  0xe0   : > { %v547_v59 = vmul.f32 %v1322_v4, %v1173_v27 }
  0xe1   : > { %v566_v29 = vsel %vm238_vm0, %v536_v13, 0.0 }
  0xe2   : > { %v568_v41 = vadd.f32 %v567_v42, %v566_v29 }
  0xe6   : > { %v498_v44 = vpop.permute.xlu1 %497  ;;  %v496_v45 = vpop.permute.xlu0 %495 }
  0xe7   : > { %v591_v47 = vpop.permute.xlu2 %590  ;;  %v539_v20 = vmul.f32 %v496_v45, %v1082_v21 }
  0xe8   : > { %v636_v3 = vmul.f32 %v591_v47, %v1068_v17  ;;  %v540_v17 = vmul.f32 %v498_v44, %v1104_v32 }
  0xe9   : > { %v554_v35 = vsel %vm238_vm0, %v539_v20, 0.0 }
  0xea   : > { %v651_v16 = vsel %vm238_vm0, %v636_v3, 0.0  ;;  %v569_v46 = vsel %vm238_vm0, %v540_v17, 0.0 }
  0xee   : > { %v504_v0 = vpop.permute.xlu1 %503  ;;  %v502_v9 = vpop.permute.xlu0 %501 }
  0xef   : > { %v597_v10 = vpop.permute.xlu2 %596  ;;  %v542_v38 = vmul.f32 %v502_v9, %v1123_v40  ;;  %v543_v44 = vmul.f32 %v504_v0, %v1120_v39 }
  0xf6   : > { %v1324_v31 = vpop.permute.xlu1 %509  ;;  %v508_v48 = vpop.permute.xlu0 %507 }
  0xf7   : > { %v603_v51 = vpop.permute.xlu2 %602 }
  0xf8   : > { %v642_v8 = vmul.f32 %v603_v51, %v1120_v39  ;;  %v556_v51 = vsel %vm238_vm0, %v541_v6, 0.0 }
  0xfa   : > { %v657_v9 = vsel %vm238_vm0, %v642_v8, 0.0 }
  0xfe   : > { %v589_v53 = vpop.permute.xlu1 %588  ;;  %v587_v43 = vpop.permute.xlu0 %586 }
  0xff   : > { %v1326_v54 = vpop.permute.xlu2 %608  ;;  %v634_v19 = vmul.f32 %v587_v43, %v1071_v18  ;;  %v552_v18 = vsel %vm238_vm0, %v537_v61, 0.0 }
 0x100   : > { %v553_v37 = vadd.f32 %v552_v18, %v551_v12 }
 0x101   : > { %v650_v22 = vsel %vm238_vm0, %v634_v19, 0.0  ;;  %v558_v19 = vsel %vm238_vm0, %v543_v44, 0.0 }
 0x102   : > { %v652_v30 = vadd.f32 %v651_v16, %v650_v22  ;;  %v555_v57 = vadd.f32 %v554_v35, %v553_v37 }
 0x104   : > { %v557_v3 = vadd.f32 %v556_v51, %v555_v57 }
 0x106   : > { %v595_v52 = vpop.permute.xlu1 %594  ;;  %v593_v55 = vpop.permute.xlu0 %592  ;;  %v559_v17 = vadd.f32 %v558_v19, %v557_v3 }
 0x107   : > { %v1330_v60 = vpop.permute.xlu2 %612  ;;  %v638_v62 = vmul.f32 %v595_v52, %v1082_v21  ;;  %v544_v21 = vmul.f32 %v506_v36, %v1140_v50  ;;  %v637_v58 = vmul.f32 %v593_v55, %v1087_v23  ;;  %v570_v52 = vadd.f32 %v569_v46, %v568_v41 }
 0x108   : > { %v639_v23 = vmul.f32 %v597_v10, %v1104_v32  ;;  %v546_v32 = vmul.f32 %v1324_v31, %v1153_v56 }
 0x109   : > { %v653_v7 = vsel %vm238_vm0, %v638_v62, 0.0  ;;  %v573_v43 = vsel %vm238_vm0, %v544_v21, 0.0  ;;  %v666_v55 = vsel %vm238_vm0, %v637_v58, 0.0  ;;  %v562_v21 = vsel %vm238_vm0, %v547_v59, 0.0 }
 0x10a   : > { %v654_v15 = vadd.f32 %v653_v7, %v652_v30  ;;  %v668_v20 = vsel %vm238_vm0, %v639_v23, 0.0 }
 0x10e   : > { %v601_v2 = vpop.permute.xlu1 %600  ;;  %v599_v11 = vpop.permute.xlu0 %598 }
 0x10f   : > { %v640_v25 = vmul.f32 %v599_v11, %v1107_v33  ;;  %v635_v33 = vmul.f32 %v589_v53, %v1090_v24  ;;  %v615_v47 = vpop.permute.xlu2 %614  ;;  %v571_v11 = vsel %vm238_vm0, %v542_v38, 0.0  ;;  %v545_v24 = vmul.f32 %v508_v48, %v1137_v49 }
 0x110   : > { %v648_v0 = vmul.f32 %v615_v47, %v1162_v63  ;;  %v641_v10 = vmul.f32 %v601_v2, %v1123_v40  ;;  %v575_v40 = vsel %vm238_vm0, %v546_v32, 0.0 }
 0x111   : > { %v655_v14 = vsel %vm238_vm0, %v640_v25, 0.0  ;;  %v665_v53 = vsel %vm238_vm0, %v635_v33, 0.0  ;;  %v560_v13 = vsel %vm238_vm0, %v545_v24, 0.0  ;;  %v647_v33 = vmul.f32 %v1330_v60, %v1170_v26 }
 0x112   : > { %v656_v45 = vadd.f32 %v655_v14, %v654_v15  ;;  %v667_v16 = vadd.f32 %v666_v55, %v665_v53  ;;  %v663_v18 = vsel %vm238_vm0, %v648_v0, 0.0  ;;  %v561_v7 = vadd.f32 %v560_v13, %v559_v17 }
 0x113   : > { %v676_v47 = vsel %vm238_vm0, %v647_v33, 0.0 }
 0x114   : > { %v658_v61 = vadd.f32 %v657_v9, %v656_v45  ;;  %v669_v42 = vadd.f32 %v668_v20, %v667_v16 }
 0x116   : > { %v607_v28 = vpop.permute.xlu1 %606  ;;  %v605_v34 = vpop.permute.xlu0 %604 }
 0x117   : > { %v644_v36 = vmul.f32 %v607_v28, %v1137_v49  ;;  %v572_v49 = vadd.f32 %v571_v11, %v570_v52  ;;  %v643_v25 = vmul.f32 %v605_v34, %v1140_v50  ;;  %v645_v50 = vmul.f32 %v1326_v54, %v1153_v56 }
 0x118   : > { %v563_v56 = vadd.f32 %v562_v21, %v561_v7 }
 0x119   : > { %v659_v39 = vsel %vm238_vm0, %v644_v36, 0.0  ;;  %v574_v2 = vadd.f32 %v573_v43, %v572_v49  ;;  %v672_v30 = vsel %vm238_vm0, %v643_v25, 0.0  ;;  %v674_v54 = vsel %vm238_vm0, %v645_v50, 0.0 }
 0x11a   : > { %v660_v22 = vadd.f32 %v659_v39, %v658_v61 }
 0x11b   : > { %v576_v34 = vadd.f32 %v575_v40, %v574_v2 }
 0x11e   : > { %v611_v62 = vpop.permute.xlu1 %610  ;;  %v514_v5 = vpop.permute.xlu0 %513 }
 0x11f   : > { %v646_v48 = vmul.f32 %v611_v62, %v1173_v27  ;;  %v548_v12 = vmul.f32 %v514_v5, %v1170_v26  ;;  %v670_v27 = vsel %vm238_vm0, %v641_v10, 0.0 }
 0x120   : > { %v671_v29 = vadd.f32 %v670_v27, %v669_v42 }
 0x121   : > { %v661_v4 = vsel %vm238_vm0, %v646_v48, 0.0  ;;  %v577_v28 = vsel %vm238_vm0, %v548_v12, 0.0 }
 0x122   : > { %v662_v31 = vadd.f32 %v661_v4, %v660_v22  ;;  %v673_v15 = vadd.f32 %v672_v30, %v671_v29  ;;  %v578_v46 = vadd.f32 %v577_v28, %v576_v34 }
 0x124   : > { %v664_v6 = vadd.f32 %v663_v18, %v662_v31  ;;  %v675_v44 = vadd.f32 %v674_v54, %v673_v15 }
 0x126   : > { %v680_v35 = vmul.f32 0.125, %v664_v6  ;;  %v518_v8 = vpop.permute.xlu1 %517  ;;  %v516_v14 = vpop.permute.xlu0 %515  ;;  %v677_v26 = vadd.f32 %v676_v47, %v675_v44 }
 0x127   : > { %v550_v37 = vmul.f32 %v518_v8, %v1190_v1  ;;  %v549_v38 = vmul.f32 %v516_v14, %v1162_v63 }
 0x128   : > { %804 = vst.msk [vmem:[%s1195_s8 + $0x40] sm:$0xff] %vm238_vm0, %v680_v35 }
 0x129   : > { %v579_v58 = vsel %vm238_vm0, %v550_v37, 0.0  ;;  %v564_v36 = vsel %vm238_vm0, %v549_v38, 0.0 }
 0x12a   : > { %v580_v41 = vadd.f32 %v579_v58, %v578_v46  ;;  %v565_v57 = vadd.f32 %v564_v36, %v563_v56 }
 0x12c   : > { %v582_v63 = vmul.f32 0.125, %v580_v41  ;;  %v581_v45 = vmul.f32 0.125, %v565_v57 }
 0x12e   : > { %803 = vst.msk [vmem:[%s1195_s8 + $0x38] sm:$0xff] %vm238_vm0, %v582_v63  ;;  %v617_v51 = vpop.permute.xlu0 %616 }
 0x12f   : > { %802 = vst.msk [vmem:[%s1195_s8 + $0x30] sm:$0xff] %vm238_vm0, %v581_v45  ;;  %v649_v43 = vmul.f32 %v617_v51, %v1190_v1 }
 0x131   : > { %v678_v60 = vsel %vm238_vm0, %v649_v43, 0.0 }
 0x132   : > { %v679_v9 = vadd.f32 %v678_v60, %v677_v26 }
 0x134   : > { %v681_v52 = vmul.f32 0.125, %v679_v9 }
 0x136   : > { %805 = vst.msk [vmem:[%s1195_s8 + $0x48] sm:$0xff] %vm238_vm0, %v681_v52 }
 0x137 PF: > { %s12_s13 = sadd.s32 1, %s893_s13   ;;  %s1426_s9 = smov %s885_s11 }
 0x138   : > { %p9_p7 = scmp.ge.s32.totalorder %s12_s13, 12   ;;  %s1427_s10 = smov %s889_s12 }
 0x139   : > { %s1428_s11 = smov %s1431_s14  ;;  %s1429_s12 = smov %s1435_s15 }
 0x13a   :  { %11 = sbr.rel (!%p9_p7) target bundleno = 3 (0x3), region = 66 }

</bundles_post_ra>
